<compile_context>
chip_gen: v7x
topology: tpu7x:2x2x1
jax: 0.10.0
libtpu: 0.0.40
codegen_flags: <defaults>
</compile_context>

<pallas_src>
import functools

import jax
import jax.numpy as jnp
from jax import lax
from jax.experimental import pallas as pl
from jax.experimental.pallas import tpu as pltpu


def _fold_conv_weight_stacked(w_hwio, scale, W, dtype):
    """Fold a per-output-channel BN scale into a 3x3 HWIO conv weight and rewrite
    the conv as ONE K-stacked block-Toeplitz matrix of shape (3*W*Cin, W*Cout).
    K index = dy*(W*Cin) + wi*Cin + ci (dy outermost).  'SAME' column padding is
    handled by dropping out-of-range taps; row padding is handled by the caller."""
    kh, kw, Cin, Cout = w_hwio.shape
    ws = (w_hwio * scale[None, None, None, :]).astype(jnp.float32)  # (3,3,Cin,Cout)
    big = jnp.zeros((kh, W, Cin, W, Cout), jnp.float32)
    for dx in range(kw):
        for wo in range(W):            # output column
            wi = wo + dx - 1           # input column this tap reads
            if 0 <= wi < W:
                big = big.at[:, wi, :, wo, :].set(ws[:, dx])
    return big.reshape(kh * W * Cin, W * Cout).astype(dtype)


def _pick_batch_block(N, H, target_rows=256):
    """Largest per-step image count B such that N % B == 0, B*H <= target_rows,
    preferring a grid of length >= 2 so both v7x TensorCores get work."""
    bmax = max(1, min(N, target_rows // max(H, 1)))
    divisors = [b for b in range(bmax, 0, -1) if N % b == 0]
    for b in divisors:
        if N // b >= 2:
            return b
    return divisors[0]


def _basic_block_kernel(lhs1_ref, w1s_ref, w2s_ref, b1_ref, b2_ref, o_ref, *, H, WC):
    # lhs1_ref: (BH, 3*WC) bf16   dy-stacked, channel-packed conv1 LHS (B images)
    # w1s_ref:  (3*WC, WC) bf16   conv1 block-Toeplitz weights, BN1 scale folded in
    # w2s_ref:  (3*WC, WC) bf16   conv2 block-Toeplitz weights, BN2 scale folded in
    # b1_ref, b2_ref: (1, WC) f32 packed (tiled) BN biases
    # o_ref:    (BH, WC)          lane-dense output slab
    f32 = jnp.float32
    lhs1 = lhs1_ref[...]                                   # (BH, 3*WC) bf16
    BH = lhs1.shape[0]
    dt = lhs1.dtype

    # ---- conv1 (+ folded BN1 scale): single K-stacked MXU matmul ----
    acc1 = jnp.dot(lhs1, w1s_ref[...], preferred_element_type=f32)   # (BH, WC)
    out1 = jnp.maximum(acc1 + b1_ref[...], 0.0)                      # BN1 bias + ReLU

    # ---- conv2 K-stacked LHS: per-image row shifts via sublane roll.
    # The masks zero the rows that would otherwise leak across image boundaries
    # (they are exactly each image's 'SAME' zero row-padding). ----
    hh = lax.broadcasted_iota(jnp.int32, (BH, WC), 0) % H
    up = jnp.where(hh != 0,     pltpu.roll(out1, shift=1,      axis=0), 0.0)  # row h-1
    dn = jnp.where(hh != H - 1, pltpu.roll(out1, shift=BH - 1, axis=0), 0.0)  # row h+1
    lhs2 = jnp.concatenate([up.astype(dt), out1.astype(dt), dn.astype(dt)], axis=1)

    # ---- conv2 (+ folded BN2 scale): single K-stacked MXU matmul ----
    acc2 = jnp.dot(lhs2, w2s_ref[...], preferred_element_type=f32)   # (BH, WC)

    # ---- BN2 bias + identity + ReLU (f32 epilogue, lane-dense store) ----
    identity = lhs1[:, WC:2 * WC].astype(f32)   # dy=1 block of the stacked LHS == x
    o_ref[...] = jnp.maximum(acc2 + b2_ref[...] + identity, 0.0).astype(o_ref.dtype)


def basic_block_forward(x_nhwc, w1, w2, bn1, bn2, eps=1e-5,
                        compute_dtype=jnp.bfloat16, target_rows=256):
    """x_nhwc: (N,H,W,Cin); w1/w2: HWIO (3,3,Cin,Cout); bn*: dict(gamma,beta,mean,var).
    Inference-mode BN.  stride=1, downsample=None (identity path) variant."""
    N, H, W, Cin = x_nhwc.shape
    Cout = w1.shape[-1]
    assert Cin == Cout, "identity path requires inplanes == planes (downsample=None)"
    assert w1.shape == (3, 3, Cin, Cout) and w2.shape == (3, 3, Cout, Cout)
    WC = W * Cin
    # Lane-dense layout assumption (perf + layout claims rely on it).
    assert WC % 128 == 0, "W*C must be a multiple of 128 for the lane-dense layout"

    # Fold BN (inference mode) into per-channel scale / bias.
    def fold(bn):
        scale = (bn["gamma"] / jnp.sqrt(bn["var"] + eps)).astype(jnp.float32)
        bias = (bn["beta"] - bn["mean"] * scale).astype(jnp.float32)
        return scale, bias

    s1, b1 = fold(bn1)
    s2, b2 = fold(bn2)

    # Offline weight rewrite: BN scale folded in, conv -> one K-stacked matmul.
    w1s = _fold_conv_weight_stacked(w1, s1, W, compute_dtype)   # (3*WC, WC)
    w2s = _fold_conv_weight_stacked(w2, s2, W, compute_dtype)   # (3*WC, WC)
    b1_p = jnp.tile(b1, W).reshape(1, WC)                       # packed biases
    b2_p = jnp.tile(b2, W).reshape(1, WC)

    # Channel-packed, lane-dense layout; rows zero-padded for the 3x3 conv, and
    # the three dy taps stacked along K in the wrapper (layout plumbing only).
    xp = jnp.pad(x_nhwc.reshape(N, H, WC), ((0, 0), (1, 1), (0, 0)))
    lhs1 = jnp.concatenate([xp[:, 0:H], xp[:, 1:H + 1], xp[:, 2:H + 2]], axis=-1)
    lhs1 = lhs1.reshape(N * H, 3 * WC).astype(compute_dtype)    # (N*H, 3*WC)

    # Batch-blocking: B images per grid step -> matmul M = B*H rows.
    B = _pick_batch_block(N, H, target_rows)
    BH = B * H
    assert BH % 8 == 0, "B*H must be a multiple of 8 (sublane alignment)"
    grid = (N // B,)

    kernel = functools.partial(_basic_block_kernel, H=H, WC=WC)

    out_packed = pl.pallas_call(
        kernel,
        out_shape=jax.ShapeDtypeStruct((N * H, WC), x_nhwc.dtype),
        grid_spec=pltpu.PrefetchScalarGridSpec(
            num_scalar_prefetch=0,
            grid=grid,
            in_specs=[
                pl.BlockSpec((BH, 3 * WC), lambda n: (n, 0)),
                pl.BlockSpec((3 * WC, WC), lambda n: (0, 0)),
                pl.BlockSpec((3 * WC, WC), lambda n: (0, 0)),
                pl.BlockSpec((1, WC), lambda n: (0, 0)),
                pl.BlockSpec((1, WC), lambda n: (0, 0)),
            ],
            out_specs=pl.BlockSpec((BH, WC), lambda n: (n, 0)),
        ),
        compiler_params=pltpu.CompilerParams(dimension_semantics=("parallel",)),
    )(lhs1, w1s, w2s, b1_p, b2_p)

    return out_packed.reshape(N, H, W, Cout)


# ------------------------- references for validation -------------------------

def _reference_matched(x_nhwc, w1, w2, bn1, bn2, eps=1e-5, dt=jnp.bfloat16):
    """BasicBlock forward with the SAME precision policy as the kernel
    (BN scale folded into weights, bf16 inputs/weights, f32 accumulation)."""
    dn = ("NHWC", "HWIO", "NHWC")

    def fold(bn):
        scale = bn["gamma"] / jnp.sqrt(bn["var"] + eps)
        return scale, bn["beta"] - bn["mean"] * scale

    s1, b1 = fold(bn1)
    s2, b2 = fold(bn2)
    xq = x_nhwc.astype(dt)
    w1q = (w1 * s1).astype(dt)
    w2q = (w2 * s2).astype(dt)
    out = lax.conv_general_dilated(xq, w1q, (1, 1), "SAME", dimension_numbers=dn,
                                   preferred_element_type=jnp.float32)
    out = jax.nn.relu(out + b1)
    out = lax.conv_general_dilated(out.astype(dt), w2q, (1, 1), "SAME",
                                   dimension_numbers=dn,
                                   preferred_element_type=jnp.float32)
    out = out + b2 + xq.astype(jnp.float32)
    return jax.nn.relu(out)


def _reference_f32(x_nhwc, w1, w2, bn1, bn2, eps=1e-5):
    """Plain f32 transcription of the PyTorch module (inference-mode BN)."""
    dn = ("NHWC", "HWIO", "NHWC")

    def bn(y, p):
        scale = p["gamma"] / jnp.sqrt(p["var"] + eps)
        return y * scale + (p["beta"] - p["mean"] * scale)

    out = lax.conv_general_dilated(x_nhwc, w1, (1, 1), "SAME", dimension_numbers=dn)
    out = jax.nn.relu(bn(out, bn1))
    out = lax.conv_general_dilated(out, w2, (1, 1), "SAME", dimension_numbers=dn)
    out = bn(out, bn2) + x_nhwc
    return jax.nn.relu(out)


if __name__ == "__main__":
    key = jax.random.PRNGKey(0)
    k_x, k_w1, k_w2, k_g1, k_b1, k_g2, k_b2, k_m1, k_v1, k_m2, k_v2 = jax.random.split(key, 11)

    # inplanes == planes, stride=1, downsample=None; W*C = 128 -> lane-dense.
    # N=16 so the batch-blocked grid has 2 parallel steps with M = 8*16 = 128.
    N, C, Hs, Ws = 16, 8, 16, 16

    x = jax.random.normal(k_x, (N, Hs, Ws, C), dtype=jnp.float32)   # NHWC
    w1 = jax.random.normal(k_w1, (3, 3, C, C), dtype=jnp.float32) * 0.1
    w2 = jax.random.normal(k_w2, (3, 3, C, C), dtype=jnp.float32) * 0.1

    bn1 = {
        "gamma": 1.0 + 0.1 * jax.random.normal(k_g1, (C,), dtype=jnp.float32),
        "beta": 0.1 * jax.random.normal(k_b1, (C,), dtype=jnp.float32),
        "mean": 0.05 * jax.random.normal(k_m1, (C,), dtype=jnp.float32),
        "var": jnp.abs(jax.random.normal(k_v1, (C,), dtype=jnp.float32)) + 0.5,
    }
    bn2 = {
        "gamma": 1.0 + 0.1 * jax.random.normal(k_g2, (C,), dtype=jnp.float32),
        "beta": 0.1 * jax.random.normal(k_b2, (C,), dtype=jnp.float32),
        "mean": 0.05 * jax.random.normal(k_m2, (C,), dtype=jnp.float32),
        "var": jnp.abs(jax.random.normal(k_v2, (C,), dtype=jnp.float32)) + 0.5,
    }

    out = jax.block_until_ready(basic_block_forward(x, w1, w2, bn1, bn2))
    assert out.shape == (N, Hs, Ws, C)

    # Tight check vs a reference using the same bf16/f32-accum precision policy.
    ref_m = jax.block_until_ready(_reference_matched(x, w1, w2, bn1, bn2))
    assert jnp.allclose(out, ref_m, atol=2e-3, rtol=2e-3), "mismatch vs matched-precision ref"

    # Loose sanity check vs the plain f32 module semantics (bf16 rounding slack).
    ref_f = jax.block_until_ready(_reference_f32(x, w1, w2, bn1, bn2))
    assert jnp.allclose(out, ref_f, atol=2e-1, rtol=1e-1), "mismatch vs f32 module ref"

    print("KERNEL_OK")
</pallas_src>

<mosaic_0001>
module attributes {stable_mosaic.version = 11 : i64} {
  func.func @_basic_block_kernel(%arg0: i32, %arg1: memref<128x384xbf16, #tpu.memory_space<vmem>>, %arg2: memref<384x128xbf16, #tpu.memory_space<vmem>>, %arg3: memref<384x128xbf16, #tpu.memory_space<vmem>>, %arg4: memref<1x128xf32, #tpu.memory_space<vmem>>, %arg5: memref<1x128xf32, #tpu.memory_space<vmem>>, %arg6: memref<128x128xf32, #tpu.memory_space<vmem>>) attributes {dimension_semantics = [#tpu.dimension_semantics<parallel>], iteration_bounds = array<i64: 2>, scalar_prefetch = 0 : i64, scratch_operands = 0 : i64, tpu.core_type = #tpu.core_type<tc>, window_params = [{transform_indices = @transform_0, window_bounds = array<i64: 128, 384>}, {pipeline_mode = #tpu.pipeline_mode<synchronous>, transform_indices = @transform_1, window_bounds = array<i64: 384, 128>}, {pipeline_mode = #tpu.pipeline_mode<synchronous>, transform_indices = @transform_2, window_bounds = array<i64: 384, 128>}, {pipeline_mode = #tpu.pipeline_mode<synchronous>, transform_indices = @transform_3, window_bounds = array<i64: 1, 128>}, {pipeline_mode = #tpu.pipeline_mode<synchronous>, transform_indices = @transform_4, window_bounds = array<i64: 1, 128>}, {transform_indices = @transform_5, window_bounds = array<i64: 128, 128>}]} {
    %c0 = arith.constant 0 : index
    %c0_0 = arith.constant 0 : index
    %0 = vector.load %arg1[%c0, %c0_0] : memref<128x384xbf16, #tpu.memory_space<vmem>>, vector<128x384xbf16>
    %c0_1 = arith.constant 0 : index
    %c0_2 = arith.constant 0 : index
    %1 = vector.load %arg2[%c0_1, %c0_2] : memref<384x128xbf16, #tpu.memory_space<vmem>>, vector<384x128xbf16>
    %cst = arith.constant dense<0.000000e+00> : vector<128x128xf32>
    %2 = tpu.matmul %0, %1, %cst {dimension_numbers = #tpu.dot_dimension_numbers<[1], [0], [0], [1], [0, 0, 1, 1], [], []>} : vector<128x384xbf16>, vector<384x128xbf16>, vector<128x128xf32> -> vector<128x128xf32>
    %c0_3 = arith.constant 0 : index
    %c0_4 = arith.constant 0 : index
    %3 = vector.load %arg4[%c0_3, %c0_4] : memref<1x128xf32, #tpu.memory_space<vmem>>, vector<1x128xf32>
    %4 = vector.broadcast %3 : vector<1x128xf32> to vector<128x128xf32>
    %5 = arith.addf %2, %4 : vector<128x128xf32>
    %cst_5 = arith.constant 0.000000e+00 : f32
    %6 = vector.broadcast %cst_5 : f32 to vector<128x128xf32>
    %7 = arith.maximumf %5, %6 : vector<128x128xf32>
    %8 = tpu.iota {dimensions = array<i32: 0>} : vector<128x128xi32>
    %c16_i32 = arith.constant 16 : i32
    %c0_i32 = arith.constant 0 : i32
    %9 = arith.cmpi eq, %c16_i32, %c0_i32 : i32
    %c1_i32 = arith.constant 1 : i32
    %10 = arith.select %9, %c1_i32, %c16_i32 : i32
    %11 = vector.broadcast %10 : i32 to vector<128x128xi32>
    %12 = arith.remsi %8, %11 : vector<128x128xi32>
    %c0_i32_6 = arith.constant 0 : i32
    %13 = vector.broadcast %c0_i32_6 : i32 to vector<128x128xi32>
    %14 = arith.cmpi ne, %12, %13 : vector<128x128xi32>
    %c0_i32_7 = arith.constant 0 : i32
    %15 = vector.broadcast %c0_i32_7 : i32 to vector<128x128xi32>
    %16 = arith.cmpi slt, %12, %15 : vector<128x128xi32>
    %c0_i32_8 = arith.constant 0 : i32
    %17 = arith.cmpi slt, %10, %c0_i32_8 : i32
    %18 = vector.broadcast %17 : i1 to vector<128x128xi1>
    %19 = vector.broadcast %18 : vector<128x128xi1> to vector<128x128xi1>
    %20 = arith.xori %16, %19 : vector<128x128xi1>
    %21 = arith.andi %20, %14 : vector<128x128xi1>
    %22 = vector.broadcast %10 : i32 to vector<128x128xi32>
    %23 = arith.addi %12, %22 : vector<128x128xi32>
    %24 = arith.select %21, %23, %12 : vector<128x128xi1>, vector<128x128xi32>
    %c0_i32_9 = arith.constant 0 : i32
    %25 = vector.broadcast %c0_i32_9 : i32 to vector<128x128xi32>
    %26 = arith.cmpi ne, %24, %25 : vector<128x128xi32>
    %c1_i32_10 = arith.constant 1 : i32
    %27 = tpu.dynamic_rotate %7 by %c1_i32_10 dim 0 : vector<128x128xf32>, i32 -> vector<128x128xf32>
    %cst_11 = arith.constant 0.000000e+00 : f32
    %28 = vector.broadcast %cst_11 : f32 to vector<128x128xf32>
    %29 = arith.select %26, %27, %28 : vector<128x128xi1>, vector<128x128xf32>
    %c15_i32 = arith.constant 15 : i32
    %30 = vector.broadcast %c15_i32 : i32 to vector<128x128xi32>
    %31 = arith.cmpi ne, %24, %30 : vector<128x128xi32>
    %c127_i32 = arith.constant 127 : i32
    %32 = tpu.dynamic_rotate %7 by %c127_i32 dim 0 : vector<128x128xf32>, i32 -> vector<128x128xf32>
    %cst_12 = arith.constant 0.000000e+00 : f32
    %33 = vector.broadcast %cst_12 : f32 to vector<128x128xf32>
    %34 = arith.select %31, %32, %33 : vector<128x128xi1>, vector<128x128xf32>
    %35 = arith.truncf %29 : vector<128x128xf32> to vector<128x128xbf16>
    %36 = arith.truncf %7 : vector<128x128xf32> to vector<128x128xbf16>
    %37 = arith.truncf %34 : vector<128x128xf32> to vector<128x128xbf16>
    %38 = tpu.concatenate %35, %36, %37 in 1 : vector<128x128xbf16>, vector<128x128xbf16>, vector<128x128xbf16> -> vector<128x384xbf16>
    %c0_13 = arith.constant 0 : index
    %c0_14 = arith.constant 0 : index
    %39 = vector.load %arg3[%c0_13, %c0_14] : memref<384x128xbf16, #tpu.memory_space<vmem>>, vector<384x128xbf16>
    %cst_15 = arith.constant dense<0.000000e+00> : vector<128x128xf32>
    %40 = tpu.matmul %38, %39, %cst_15 {dimension_numbers = #tpu.dot_dimension_numbers<[1], [0], [0], [1], [0, 0, 1, 1], [], []>} : vector<128x384xbf16>, vector<384x128xbf16>, vector<128x128xf32> -> vector<128x128xf32>
    %41 = vector.extract_strided_slice %0 {offsets = [0, 128], sizes = [128, 128], strides = [1, 1]} : vector<128x384xbf16> to vector<128x128xbf16>
    %42 = arith.extf %41 : vector<128x128xbf16> to vector<128x128xf32>
    %c0_16 = arith.constant 0 : index
    %c0_17 = arith.constant 0 : index
    %43 = vector.load %arg5[%c0_16, %c0_17] : memref<1x128xf32, #tpu.memory_space<vmem>>, vector<1x128xf32>
    %44 = vector.broadcast %43 : vector<1x128xf32> to vector<128x128xf32>
    %45 = arith.addf %40, %44 : vector<128x128xf32>
    %46 = arith.addf %45, %42 : vector<128x128xf32>
    %cst_18 = arith.constant 0.000000e+00 : f32
    %47 = vector.broadcast %cst_18 : f32 to vector<128x128xf32>
    %48 = arith.maximumf %46, %47 : vector<128x128xf32>
    %c0_19 = arith.constant 0 : index
    %c0_20 = arith.constant 0 : index
    %49 = vector.load %arg6[%c0_19, %c0_20] : memref<128x128xf32, #tpu.memory_space<vmem>>, vector<128x128xf32>
    tpu.vector_store %arg6[%c0_19, %c0_20], %48 {strides = array<i32>} : memref<128x128xf32, #tpu.memory_space<vmem>>, vector<128x128xf32>,
    return
  }
  func.func @transform_0(%arg0: i32) -> (i32, i32) {
    %c0_i32 = arith.constant 0 : i32
    %c0_i32_0 = arith.constant 0 : i32
    return %arg0, %c0_i32 : i32, i32
  }
  func.func @transform_1(%arg0: i32) -> (i32, i32) {
    %c0_i32 = arith.constant 0 : i32
    %c0_i32_0 = arith.constant 0 : i32
    %c0_i32_1 = arith.constant 0 : i32
    return %c0_i32, %c0_i32_0 : i32, i32
  }
  func.func @transform_2(%arg0: i32) -> (i32, i32) {
    %c0_i32 = arith.constant 0 : i32
    %c0_i32_0 = arith.constant 0 : i32
    %c0_i32_1 = arith.constant 0 : i32
    return %c0_i32, %c0_i32_0 : i32, i32
  }
  func.func @transform_3(%arg0: i32) -> (i32, i32) {
    %c0_i32 = arith.constant 0 : i32
    %c0_i32_0 = arith.constant 0 : i32
    %c0_i32_1 = arith.constant 0 : i32
    return %c0_i32, %c0_i32_0 : i32, i32
  }
  func.func @transform_4(%arg0: i32) -> (i32, i32) {
    %c0_i32 = arith.constant 0 : i32
    %c0_i32_0 = arith.constant 0 : i32
    %c0_i32_1 = arith.constant 0 : i32
    return %c0_i32, %c0_i32_0 : i32, i32
  }
  func.func @transform_5(%arg0: i32) -> (i32, i32) {
    %c0_i32 = arith.constant 0 : i32
    %c0_i32_0 = arith.constant 0 : i32
    return %arg0, %c0_i32 : i32, i32
  }
}

</mosaic_0001>

<bundles_post_ra>
// kernel: tpu_custom_call.1
= control target key start
LH: loop header
LB: loop body
LE: loop exit
PB: predicated region body
PF: predicated region fallthrough
CT: control target
= control target key end

     0   :  { %10 = vsyncpa [#allocation3], 0  ;;  %s3242_s0 = inlined_call_operand.hbm [shape: bf16[256,384], index: 0, kind: input, shape index: {}]   ;;  %s3243_s1 = inlined_call_operand.hbm [shape: bf16[384,128], index: 1, kind: input, shape index: {}]   ;;  %s3244_s2 = inlined_call_operand.hbm [shape: bf16[384,128], index: 2, kind: input, shape index: {}]   ;;  %s3245_s3 = inlined_call_operand.vmem [shape: f32[1,128], index: 3, kind: input, shape index: {}]   ;;  %s3246_s4 = inlined_call_operand.vmem [shape: f32[1,128], index: 4, kind: input, shape index: {}]   ;;  %s3247_s5 = inlined_call_operand.hbm [shape: f32[256,128], index: 5, kind: output, shape index: {}]  }
   0x1   :  { %12 = vsyncpa [#allocation3 + $0x1], 0 }
   0x2   :  { %13 = vsyncpa [#allocation6], 0 }
   0x3   :  { %14 = vsyncpa [#allocation4], 0 }
   0x4   :  { %16 = vsyncpa [#allocation4 + $0x1], 0  ;;  %s2515_s18 = smov 0   ;;  %s2517_s19 = smov 0  }
   0x5   :  { %s2519_s20 = smov 0   ;;  %s2521_s21 = smov 0  }
   0x6 LB: > { %s2536_s22 = sadd.s32 4294967295, %s2472_s21   ;;  %s1803_s23 = sadd.s32 4294967294, %s2472_s21   ;;  %s2472_s21 = sphi %s2521_s21, %s3287_s21   ;;  %s2468_s20 = sphi %s2519_s20, %s3286_s20   ;;  %s2464_s19 = sphi %s2517_s19, %s3285_s19   ;;  %s2460_s18 = sphi %s2515_s18, %s3284_s18  }
   0x7   : > { %p42_p0 = scmp.ne.s32.totalorder %s2464_s19, %s2460_s18  ;;  %p3248_p1 = scmp.eq.s32.totalorder %s2536_s22, 0 }
   0x8   : > { %p156_p3 = scmp.eq.s32.totalorder %s1803_s23, 1  ;;  %p1804_p5 = scmp.ge.s32.totalorder %s2472_s21, 1 }
   0x9   : > { %p2545_p4 = por %p3248_p1, %p42_p0  ;;  %p163_p7 = scmp.lt.s32.totalorder %s2472_s21, 3 }
   0xa   : > { %p2550_p6 = por %p156_p3, %p42_p0  ;;  %s2474_s27 = smov [#allocation5]  }
   0xb   : > { %s3254_s24 = scalar_select %p2545_p4, 1, 0 }
   0xc   : > { %s3255_s25 = scalar_select %p2550_p6, 1, 0 }
   0xd   : > { %p2555_p8 = pnand %p1804_p5, %p163_p7  ;;  %s175_s28 = sshll.u32 %s2474_s27, 4  ;;  %s2559_s28 = int_to_ptr.vmem [resolvable:$true] %s175_s28 }
   0xe   : > { %s2475_s30 = smov [#allocation7]   ;;  %s2316_s9 = scalar_lea.hbm %s3243_s1, 3072 }
   0xf   : > { %p2182_p9 = pneg %p2555_p8  ;;  %s188_s6 = sshll.u32 %s2475_s30, 4  ;;  %s2570_s6 = int_to_ptr.vmem [resolvable:$true] %s188_s6 }
  0x10   : > { %p2317_p12 = scmp.ne.s32.totalorder %s3243_s1, %s2316_s9  ;;  %p2323_p5 = scmp.lt.u32.totalorder %s2316_s9, %s3243_s1 }
  0x11   : > { %p2566_p11 = pnand %p2182_p9, %p3248_p1 }
  0x13   : > { %p2318_p13 = pneg %p2566_p11 }
  0x15   : > { %p2319_p0 = pnand %p2318_p13, %p2317_p12 }
  0x17   : > { %p2320_p3 = pneg %p2319_p0 }
  0x19   : > { %p2325_p7 = pnand %p2323_p5, %p2320_p3 }
  0x1b   : > { %2328 = shalt.err (!%p2325_p7)
}
  0x1c   : > { %s2329_s14 = scalar_lea.vmem %s2559_s28, 3072  ;;  %p2337_p2 = scmp.lt.s32.totalorder %s2559_s28, %s2559_s28 }
  0x1d   : > { %p2330_p9 = scmp.ne.s32.totalorder %s2559_s28, %s2329_s14  ;;  %p2338_p12 = scmp.lt.s32.totalorder %s2329_s14, %s2329_s14 }
  0x1f   : > { %p2332_p10 = pnand %p2330_p9, %p2318_p13  ;;  %p2339_p0 = por %p2338_p12, %p2337_p2 }
  0x21   : > { %p2333_p1 = pneg %p2332_p10 }
  0x23   : > { %p2340_p6 = pnand %p2339_p0, %p2333_p1 }
  0x25   : > { %2343 = shalt.err (!%p2340_p6)
}
  0x26   : > { %s2476_s15 = smov 64   ;;  %s2477_s16 = smov 4  }
  0x27   : > { %2185 = dma.hbm_to_vmem [thread:$0]  (!%p2566_p11), %s3243_s1, 3072, %s2559_s28, [#allocation6], %s2476_s15, %s2476_s15, %s2477_s16  }
  0x28   : > { %s2344_s7 = scalar_lea.hbm %s3244_s2, 3072 }
  0x29   : > { %p2345_p2 = scmp.ne.s32.totalorder %s3244_s2, %s2344_s7  ;;  %p2351_p10 = scmp.lt.u32.totalorder %s2344_s7, %s3244_s2 }
  0x2b   : > { %p2347_p1 = pnand %p2345_p2, %p2318_p13 }
  0x2d   : > { %p2348_p6 = pneg %p2347_p1 }
  0x2f   : > { %p2353_p3 = pnand %p2351_p10, %p2348_p6 }
  0x31   : > { %2356 = shalt.err (!%p2353_p3)
}
  0x32   : > { %s2357_s28 = scalar_lea.vmem %s2570_s6, 3072  ;;  %p2365_p12 = scmp.lt.s32.totalorder %s2570_s6, %s2570_s6 }
  0x33   : > { %p2358_p5 = scmp.ne.s32.totalorder %s2570_s6, %s2357_s28  ;;  %p2366_p0 = scmp.lt.s32.totalorder %s2357_s28, %s2357_s28 }
  0x35   : > { %p2360_p7 = pnand %p2358_p5, %p2318_p13  ;;  %p2367_p2 = por %p2366_p0, %p2365_p12 }
  0x37   : > { %p2361_p9 = pneg %p2360_p7 }
  0x39   : > { %p2368_p1 = pnand %p2367_p2, %p2361_p9 }
  0x3b   : > { %2371 = shalt.err (!%p2368_p1)
}
  0x3c   : > { %2188 = dma.hbm_to_vmem [thread:$0]  (!%p2566_p11), %s3244_s2, 3072, %s2570_s6, [#allocation6], %s2476_s15, %s2476_s15, %s2477_s16  }
  0x3d   : > { %s2625_s14 = sadd.s32 1, %s2472_s21   ;;  %s29_s29 = sadd.s32 1, %s2468_s20 }
  0x3e   : > { %s26_s17 = ssub.s32 %s2472_s21, %s2625_s14  ;;  %p36_p13 = scmp.ne.s32.totalorder %s2468_s20, %s2464_s19 }
  0x3f   : > { %p27_p6 = scmp.eq.s32.totalorder %s26_s17, 0  ;;  %p37_p10 = scmp.eq.s32.totalorder %s2472_s21, 0 }
  0x40   : > { %p3258_p3 = scmp.eq.s32.totalorder %s2536_s22, 1  ;;  %p2199_p7 = scmp.lt.s32.totalorder %s2472_s21, 2 }
  0x41   : > { %s2641_s27 = scalar_select %p27_p6, %s2468_s20, %s29_s29  }
  0x42   : > { %p2635_p5 = por %p3258_p3, %p36_p13  ;;  %p38_p9 = por %p37_p10, %p36_p13 }
  0x43   : > { %s208_s30 = sand.u32 1, %s2468_s20   ;;  %s2168_s6 = smul.u32 3072, %s2472_s21 }
  0x44   : > { %s3259_s23 = scalar_select %p2635_p5, 1, 0 }
  0x45   : > { %s2167_s7 = smul.u32 192, %s208_s30  ;;  %p2645_p11 = pnand %p2199_p7, %p38_p9 }
  0x46   : > { %s2652_s9 = scalar_lea.hbm %s3242_s0, %s2168_s6  ;;  %s2656_s28 = scalar_lea.sflag [#allocation3], %s208_s30 }
  0x47   : > { %s212_s10 = scalar_lea.vmem [#allocation2], %s2167_s7  ;;  %s2372_s12 = scalar_lea.hbm %s2652_s9, 3072 }
  0x48   : > { %s220_s11 = sshll.u32 %s212_s10, 4  ;;  %p2373_p12 = scmp.ne.s32.totalorder %s2652_s9, %s2372_s12  ;;  %s2654_s11 = int_to_ptr.vmem [resolvable:$true] %s220_s11 }
  0x49   : > { %p2374_p0 = pneg %p2645_p11  ;;  %s2377_s17 = scalar_lea.hbm %s3242_s0, 6144 }
  0x4a   : > { %p2378_p13 = scmp.lt.u32.totalorder %s2652_s9, %s3242_s0  ;;  %p2379_p6 = scmp.lt.u32.totalorder %s2377_s17, %s2372_s12 }
  0x4b   : > { %p2375_p2 = pnand %p2374_p0, %p2373_p12  ;;  %p2381_p3 = scmp.lt.u32.totalorder %s2372_s12, %s2652_s9 }
  0x4c   : > { %p2380_p10 = por %p2379_p6, %p2378_p13 }
  0x4d   : > { %p2376_p1 = pneg %p2375_p2 }
  0x4e   : > { %p2382_p7 = por %p2381_p3, %p2380_p10 }
  0x50   : > { %p2383_p9 = pnand %p2382_p7, %p2376_p1 }
  0x52   : > { %2386 = shalt.err (!%p2383_p9)
}
  0x53   : > { %s2387_s30 = scalar_lea.vmem %s2654_s11, 3072  ;;  %s2478_s7 = smov [#allocation2]  }
  0x54   : > { %p2388_p12 = scmp.ne.s32.totalorder %s2654_s11, %s2387_s30  ;;  %s2392_s8 = sshll.u32 %s2478_s7, 4  ;;  %s2393_s8 = int_to_ptr.vmem [resolvable:$false] %s2392_s8 }
  0x55   : > { %s2394_s10 = scalar_lea.vmem %s2393_s8, 6144  ;;  %p2395_p4 = scmp.lt.s32.totalorder %s2654_s11, %s2393_s8 }
  0x56   : > { %p2390_p2 = pnand %p2388_p12, %p2374_p0  ;;  %p2396_p13 = scmp.lt.s32.totalorder %s2394_s10, %s2387_s30 }
  0x58   : > { %p2391_p5 = pneg %p2390_p2  ;;  %p2397_p6 = por %p2396_p13, %p2395_p4 }
  0x5a   : > { %p2398_p10 = pnand %p2397_p6, %p2391_p5 }
  0x5c   : > { %2401 = shalt.err (!%p2398_p10)
}
  0x5d   : > { %s2479_s12 = smov 192   ;;  %s2480_s13 = smov 12  }
  0x5e   : > { %2192 = dma.hbm_to_vmem [thread:$0]  (!%p2645_p11), %s2652_s9, 3072, %s2654_s11, %s2656_s28, %s2479_s12, %s2479_s12, %s2480_s13  }
  0x5f   : > { %232 = sbr.rel (%p2555_p8) target bundleno = 723 (0x2d3), region = 40 }
  0x66   : > { %s2687_s29 = sand.u32 1, %s2464_s19   ;;  %p3261_p4 = scmp.ne.s32.totalorder %s3254_s24, 0 }
  0x67   : > { %s2169_s17 = smul.u32 192, %s2687_s29  ;;  %s235_s6 = scalar_lea.sflag [#allocation3], %s2687_s29 }
  0x69   : > { %s2691_s16 = scalar_lea.vmem [#allocation2], %s2169_s17 }
  0x6a   : > { %2447 = dma.done.wait (%p3261_p4), %s235_s6, 3072  }
  0x6b   : > { %2449 = vsyncadd (%p3261_p4), %s235_s6, 4294964224  ;;  %p3262_p5 = scmp.eq.s32.totalorder %s2536_s22, 0 }
  0x6d   : > { %2451 = dma.done.wait (%p3262_p5), [#allocation6], 6144   ;;  %p3263_p8 = pmov %p3262_p5 }
  0x6e   : > { %v2244_v0 = vld [vmem:[#allocation5 + $0x40] sm:$0xff]   ;;  %v2246_v2 = vld [vmem:[#allocation5 + $0x48] sm:$0xff]   ;;  %v2249_v5 = vld [vmem:[#allocation5 + $0x50] sm:$0xff]   ;;  %vm2481_vm3 = vmmov 1   ;;  %s1814_s11 = sshll.u32 %s2687_s29, 7  ;;  %s1942_s30 = sshll.u32 %s2536_s22, 11 }
  0x6f   : > { %2453 = vsyncadd (%p3263_p8), [#allocation6], 4294961152  ;;  %v2245_v1 = vld [vmem:[#allocation5] sm:$0xff]   ;;  %1943 = vmatprep.subr.bf16.mxu0 %v2244_v0  ;;  %v2248_v4 = vld [vmem:[#allocation5 + $0x8] sm:$0xff]   ;;  %s3135_s28 = scalar_lea.vmem [#allocation8], %s1814_s11  ;;  %s3194_s12 = scalar_lea.hbm %s3247_s5, %s1942_s30 }
  0x70   : > { %1944 = vmatpush3.bf16.msra.mxu0 %v2245_v1  ;;  %v2247_v3 = vld [vmem:[#allocation5 + $0x80] sm:$0xff]   ;;  %v2250_v6 = vld [vmem:[#allocation5 + $0x88] sm:$0xff]   ;;  %v2251_v7 = vld [vmem:[#allocation5 + $0x10] sm:$0xff]   ;;  %s1711_s7 = sshll.u32 %s3135_s28, 4  ;;  %s1698_s13 = scalar_lea.sflag [#allocation4], %s2687_s29  ;;  %s3196_s7 = int_to_ptr.vmem [resolvable:$true] %s1711_s7 }
  0x71   : > { %1945 = vmatprep.subr.bf16.mxu0 %v2246_v2  ;;  %2103 = vmatprep.subr.bf16.mxu1 %v2247_v3  ;;  %v2252_v8 = vld [vmem:[#allocation5 + $0x58] sm:$0xff]   ;;  %v2253_v9 = vld [vmem:[#allocation5 + $0x90] sm:$0xff]   ;;  %v2255_v11 = vld [vmem:[#allocation5 + $0x60] sm:$0xff]   ;;  %s2402_s17 = scalar_lea.vmem %s3196_s7, 2048  ;;  %p3281_p0 = scmp.ne.s32.totalorder %s3259_s23, 0 }
  0x72   : > { %2104 = vmatpush3.bf16.msra.mxu1 %v2247_v3  ;;  %v2254_v10 = vld [vmem:[#allocation5 + $0x18] sm:$0xff]   ;;  %v2257_v13 = vld [vmem:[#allocation5 + $0x20] sm:$0xff]   ;;  %v2258_v15 = vld [vmem:[#allocation5 + $0x68] sm:$0xff]   ;;  %p2403_p11 = scmp.ne.s32.totalorder %s3196_s7, %s2402_s17  ;;  %s2482_s22 = smov [#allocation8]  }
  0x73   : > { %2105 = vmatprep.subr.bf16.mxu1 %v2250_v6  ;;  %v2256_v12 = vld [vmem:[#allocation5 + $0x98] sm:$0xff]   ;;  %v2259_v14 = vld [vmem:[#allocation5 + $0xa0] sm:$0xff]   ;;  %v2260_v16 = vld [vmem:[#allocation5 + $0x28] sm:$0xff]   ;;  %s2406_s6 = sshll.u32 %s2482_s22, 4  ;;  %s2407_s6 = int_to_ptr.vmem [resolvable:$false] %s2406_s6 }
  0x74   : > { %1946 = vmatpush3.bf16.msra.mxu0 %v2248_v4  ;;  %v2262_v17 = vld [vmem:[#allocation5 + $0xa8] sm:$0xff]   ;;  %v2261_v18 = vld [vmem:[#allocation5 + $0x70] sm:$0xff]   ;;  %v2702_v21 = vld [vmem:[%s2691_s16] sm:$0xff]  ;;  %p2404_p1 = pnand %p2403_p11, %p3281_p0  ;;  %p2409_p7 = scmp.lt.s32.totalorder %s3196_s7, %s2407_s6 }
  0x75   : > { %1947 = vmatprep.subr.bf16.mxu0 %v2249_v5  ;;  %v2263_v19 = vld [vmem:[#allocation5 + $0x30] sm:$0xff]   ;;  %v2264_v23 = vld [vmem:[#allocation5 + $0x78] sm:$0xff]   ;;  %v2714_v29 = vld [vmem:[%s2691_s16 + $0x24] sm:$0xff] }
  0x76   : > { %2106 = vmatpush3.bf16.msra.mxu1 %v2250_v6  ;;  %v2265_v20 = vld [vmem:[#allocation5 + $0xb0] sm:$0xff]   ;;  %v2266_v26 = vld [vmem:[#allocation5 + $0x38] sm:$0xff]   ;;  %v2271_v32 = vld [vmem:[%s2691_s16 + $0x20] ss:$12 sps:$4 sm:$0xff]   ;;  %p2405_p3 = pneg %p2404_p1 }
  0x77   : > { %2107 = vmatprep.subr.bf16.mxu1 %v2253_v9  ;;  %v2705_v22 = vld [vmem:[%s2691_s16 + $0xc] sm:$0xff]  ;;  %v2270_v25 = vld [vmem:[%s2691_s16 + $0x8] ss:$12 sps:$4 sm:$0xff]   ;;  %v2269_v27 = vld [vmem:[#allocation5 + $0xb8] sm:$0xff]  }
  0x78   : > { %1948 = vmatpush3.bf16.msra.mxu0 %v2251_v7  ;;  %v1817_v24 = vcombine.high %v2702_v21, %v2705_v22  ;;  %v2711_v28 = vld [vmem:[%s2691_s16 + $0x18] sm:$0xff]  ;;  %2119 = vmatprep.mubr.bf16.mxu1 %v2270_v25  ;;  %v1816_v30 = vcombine.low %v2702_v21, %v2705_v22  ;;  %v2723_v34 = vld [vmem:[%s2691_s16 + $0x30] sm:$0xff]  ;;  %v2292_v39 = vld [vmem:[#allocation7 + $0x80] sm:$0xff]  }
  0x79   : > { %1949 = vmatprep.subr.bf16.mxu0 %v2252_v8  ;;  %v1820_v31 = vcombine.high %v2711_v28, %v2714_v29  ;;  %v2276_v33 = vld [vmem:[%s2691_s16 + $0x38] ss:$12 sps:$4 sm:$0xff]   ;;  %v2726_v35 = vld [vmem:[%s2691_s16 + $0x3c] sm:$0xff]  ;;  %v1819_v36 = vcombine.low %v2711_v28, %v2714_v29  ;;  %v2282_v40 = vld [vmem:[%s2691_s16 + $0x68] ss:$12 sps:$4 sm:$0xff]  }
  0x7a   : > { %2108 = vmatpush3.bf16.msra.mxu1 %v2253_v9  ;;  %667 = vmatprep.mubr.bf16.mxu0 %v1817_v24  ;;  %v1823_v37 = vcombine.high %v2723_v34, %v2726_v35  ;;  %v2277_v38 = vld [vmem:[%s2691_s16 + $0x50] ss:$12 sps:$4 sm:$0xff]   ;;  %v2735_v41 = vld [vmem:[%s2691_s16 + $0x48] sm:$0xff]  ;;  %v2738_v42 = vld [vmem:[%s2691_s16 + $0x54] sm:$0xff]  ;;  %v1822_v43 = vcombine.low %v2723_v34, %v2726_v35 }
  0x7b   : > { %2109 = vmatprep.subr.bf16.mxu1 %v2256_v12  ;;  %v1826_v44 = vcombine.high %v2735_v41, %v2738_v42  ;;  %v2283_v45 = vld [vmem:[%s2691_s16 + $0x80] ss:$12 sps:$4 sm:$0xff]   ;;  %v2288_v46 = vld [vmem:[%s2691_s16 + $0x98] ss:$12 sps:$4 sm:$0xff]   ;;  %v1825_v49 = vcombine.low %v2735_v41, %v2738_v42  ;;  %v2289_v51 = vld [vmem:[%s2691_s16 + $0xb0] ss:$12 sps:$4 sm:$0xff]  }
  0x7c   : > { %1950 = vmatpush3.bf16.msra.mxu0 %v2254_v10  ;;  %v2747_v47 = vld [vmem:[%s2691_s16 + $0x60] sm:$0xff]  ;;  %v2750_v48 = vld [vmem:[%s2691_s16 + $0x6c] sm:$0xff]  ;;  %v2758_v52 = vld [vmem:[%s2691_s16 + $0x78] sm:$0xff] }
  0x7d   : > { %1951 = vmatprep.subr.bf16.mxu0 %v2255_v11  ;;  %v1829_v50 = vcombine.high %v2747_v47, %v2750_v48  ;;  %v2761_v53 = vld [vmem:[%s2691_s16 + $0x84] sm:$0xff]  ;;  %v1828_v54 = vcombine.low %v2747_v47, %v2750_v48  ;;  %v2768_v56 = vld [vmem:[%s2691_s16 + $0x90] sm:$0xff]  ;;  %v2771_v57 = vld [vmem:[%s2691_s16 + $0x9c] sm:$0xff] }
  0x7e   : > { %2110 = vmatpush3.bf16.msra.mxu1 %v2256_v12  ;;  %v1832_v55 = vcombine.high %v2758_v52, %v2761_v53  ;;  %v1831_v58 = vcombine.low %v2758_v52, %v2761_v53  ;;  %v1835_v59 = vcombine.high %v2768_v56, %v2771_v57  ;;  %v2778_v60 = vld [vmem:[%s2691_s16 + $0xa8] sm:$0xff]  ;;  %v2781_v61 = vld [vmem:[%s2691_s16 + $0xb4] sm:$0xff]  ;;  %v1834_v62 = vcombine.low %v2768_v56, %v2771_v57  ;;  %v2296_v4 = vld [vmem:[#allocation7 + $0xa0] sm:$0xff]   ;;  %s2408_s16 = scalar_lea.vmem %s2407_s6, 4096 }
  0x7f   : > { %2111 = vmatprep.subr.bf16.mxu1 %v2259_v14  ;;  %3264 = vst [vmem:[#allocation12_spill] sm:$0xff] %v2781_v61  ;;  %v1838_v63 = vcombine.high %v2778_v60, %v2781_v61  ;;  %v1837_v0 = vcombine.low %v2778_v60, %v2781_v61  ;;  %v2293_v1 = vld [vmem:[#allocation7 + $0x88] sm:$0xff]   ;;  %v2294_v2 = vld [vmem:[#allocation7 + $0x90] sm:$0xff]   ;;  %v2295_v3 = vld [vmem:[#allocation7 + $0x98] sm:$0xff]   ;;  %p2410_p9 = scmp.lt.s32.totalorder %s2408_s16, %s2402_s17 }
  0x80   : > { %1952 = vmatpush3.bf16.msra.mxu0 %v2257_v13  ;;  %v2297_v5 = vld [vmem:[#allocation7 + $0xa8] sm:$0xff]   ;;  %v2298_v6 = vld [vmem:[#allocation7 + $0xb0] sm:$0xff]   ;;  %v2299_v7 = vld [vmem:[#allocation7 + $0xb8] sm:$0xff]  }
  0x81   : > { %1953 = vmatprep.subr.bf16.mxu0 %v2258_v15  ;;  %v2300_v8 = vld [vmem:[#allocation7 + $0x40] sm:$0xff]   ;;  %v2302_v10 = vld [vmem:[#allocation7 + $0x48] sm:$0xff]   ;;  %v2304_v12 = vld [vmem:[#allocation7 + $0x50] sm:$0xff]   ;;  %p2411_p12 = por %p2410_p9, %p2409_p7 }
  0x82   : > { %2112 = vmatpush3.bf16.msra.mxu1 %v2259_v14  ;;  %v2301_v9 = vld [vmem:[#allocation7] sm:$0xff]   ;;  %v2303_v11 = vld [vmem:[#allocation7 + $0x8] sm:$0xff]   ;;  %v2305_v13 = vld [vmem:[#allocation7 + $0x10] sm:$0xff]  }
  0x83   : > { %2113 = vmatprep.subr.bf16.mxu1 %v2262_v17  ;;  %v2306_v14 = vld [vmem:[#allocation7 + $0x58] sm:$0xff]   ;;  %p2412_p2 = pnand %p2411_p12, %p2405_p3 }
  0x84   : > { %1954 = vmatpush3.bf16.msra.mxu0 %v2260_v16  ;;  %v2307_v15 = vld [vmem:[#allocation7 + $0x18] sm:$0xff]   ;;  %v2308_v16 = vld [vmem:[#allocation7 + $0x60] sm:$0xff]  }
  0x85   : > { %1955 = vmatprep.subr.bf16.mxu0 %v2261_v18  ;;  %v2310_v18 = vld [vmem:[#allocation7 + $0x68] sm:$0xff]   ;;  %v2314_v24 = vld [vmem:[#allocation7 + $0x78] sm:$0xff]  }
  0x86   : > { %2114 = vmatpush3.bf16.msra.mxu1 %v2262_v17  ;;  %v2309_v17 = vld [vmem:[#allocation7 + $0x20] sm:$0xff]   ;;  %v2315_v25 = vld [vmem:[#allocation7 + $0x38] sm:$0xff]  }
  0x87   : > { %2115 = vmatprep.subr.bf16.mxu1 %v2265_v20 }
  0x88   : > { %1956 = vmatpush3.bf16.msra.mxu0 %v2263_v19  ;;  %v2311_v19 = vld [vmem:[#allocation7 + $0x28] sm:$0xff]  }
  0x89   : > { %1957 = vmatprep.subr.bf16.mxu0 %v2264_v23  ;;  %v2313_v23 = vld [vmem:[#allocation7 + $0x30] sm:$0xff]  }
  0x8a   : > { %2116 = vmatpush3.bf16.msra.mxu1 %v2265_v20  ;;  %v2312_v20 = vld [vmem:[#allocation7 + $0x70] sm:$0xff]  }
  0x8b   : > { %2117 = vmatprep.subr.bf16.mxu1 %v2269_v27 }
  0x8c   : > { %1958 = vmatpush3.bf16.msra.mxu0 %v2266_v26 }
  0x8d   : > { %2135 = vmatprep.subr.bf16.mxu0 %v2292_v39 }
  0x8e   : > { %2118 = vmatpush3.bf16.msra.mxu1 %v2269_v27 }
  0x8f   : > { %668 = vmatmul.mubr.bf16.vlgmr.msra.gmra.mrb[0].mxu0 %v1816_v30  ;;  %2023 = vmatprep.subr.bf16.mxu1 %v2300_v8  ;;  %v2792_v30 = vld [vmem:[%s3245_s3] ss:$0 sm:$0xff] }
  0x90   : > { %675 = vmatprep.mubr.bf16.mxu0 %v1820_v31  ;;  %2136 = vmatpush3.bf16.msra.mxu0 %v2292_v39 }
  0x91   : > { %2120 = vmatmul.mubr.bf16.vlgmr.msra.gmra.mrb[0].mxu1 %v2271_v32  ;;  %2137 = vmatprep.subr.bf16.mxu0 %v2293_v1 }
  0x92   : > { %2123 = vmatprep.mubr.bf16.mxu1 %v2276_v33  ;;  %2024 = vmatpush3.bf16.msra.mxu1 %v2301_v9 }
  0x93   : > { %2025 = vmatprep.subr.bf16.mxu1 %v2302_v10 }
  0x94   : > { %2138 = vmatpush3.bf16.msra.mxu0 %v2293_v1 }
  0x95   : > { %2139 = vmatprep.subr.bf16.mxu0 %v2294_v2 }
  0x96   : > { %2026 = vmatpush3.bf16.msra.mxu1 %v2303_v11 }
  0x97   : > { %676 = vmatmul.mubr.bf16.gmra.mrb[4].mxu0 %v1819_v36  ;;  %2027 = vmatprep.subr.bf16.mxu1 %v2304_v12 }
  0x98   : > { %683 = vmatprep.mubr.bf16.mxu0 %v1823_v37  ;;  %2140 = vmatpush3.bf16.msra.mxu0 %v2294_v2  ;;  %v845_v37 = vlaneseq }
  0x99   : > { %2124 = vmatmul.mubr.bf16.gmra.mrb[4].mxu1 %v2277_v38  ;;  %2141 = vmatprep.subr.bf16.mxu0 %v2295_v3 }
  0x9a   : > { %2127 = vmatprep.mubr.bf16.mxu1 %v2282_v40  ;;  %2028 = vmatpush3.bf16.msra.mxu1 %v2305_v13 }
  0x9b   : > { %2029 = vmatprep.subr.bf16.mxu1 %v2306_v14 }
  0x9c   : > { %2142 = vmatpush3.bf16.msra.mxu0 %v2295_v3 }
  0x9d   : > { %2143 = vmatprep.subr.bf16.mxu0 %v2296_v4 }
  0x9e   : > { %2030 = vmatpush3.bf16.msra.mxu1 %v2307_v15 }
  0x9f   : > { %684 = vmatmul.mubr.bf16.gmra.mrb[8].mxu0 %v1822_v43  ;;  %2031 = vmatprep.subr.bf16.mxu1 %v2308_v16 }
  0xa0   : > { %691 = vmatprep.mubr.bf16.mxu0 %v1826_v44  ;;  %2144 = vmatpush3.bf16.msra.mxu0 %v2296_v4 }
  0xa1   : > { %2128 = vmatmul.mubr.bf16.gmra.mrb[8].mxu1 %v2283_v45  ;;  %2145 = vmatprep.subr.bf16.mxu0 %v2297_v5 }
  0xa2   : > { %2131 = vmatprep.mubr.bf16.mxu1 %v2288_v46  ;;  %2032 = vmatpush3.bf16.msra.mxu1 %v2309_v17 }
  0xa3   : > { %2033 = vmatprep.subr.bf16.mxu1 %v2310_v18 }
  0xa4   : > { %2146 = vmatpush3.bf16.msra.mxu0 %v2297_v5 }
  0xa5   : > { %2147 = vmatprep.subr.bf16.mxu0 %v2298_v6 }
  0xa6   : > { %2034 = vmatpush3.bf16.msra.mxu1 %v2311_v19 }
  0xa7   : > { %692 = vmatmul.mubr.bf16.gmra.mrb[12].mxu0 %v1825_v49  ;;  %2035 = vmatprep.subr.bf16.mxu1 %v2312_v20  ;;  %v2796_v49 = vshrl.u32 %v845_v37, 7 }
  0xa8   : > { %699 = vmatprep.mubr.bf16.mxu0 %v1829_v50  ;;  %2148 = vmatpush3.bf16.msra.mxu0 %v2298_v6 }
  0xa9   : > { %2132 = vmatmul.mubr.bf16.gmra.mrb[12].mxu1 %v2289_v51  ;;  %2149 = vmatprep.subr.bf16.mxu0 %v2299_v7  ;;  %vm1086_vm0 = vcmp.lt.s32.totalorder %v2796_v49, 1  ;;  %vm1151_vm1 = vcmp.lt.s32.totalorder %v2796_v49, 7 }
  0xaa   : > { %2036 = vmatpush3.bf16.msra.mxu1 %v2313_v23 }
  0xab   : > { %2037 = vmatprep.subr.bf16.mxu1 %v2314_v24  ;;  %v849_v24 = vadd.s32 24, %v2796_v49 }
  0xac   : > { %2150 = vmatpush3.bf16.msra.mxu0 %v2299_v7 }
  0xae   : > { %2038 = vmatpush3.bf16.msra.mxu1 %v2315_v25 }
  0xaf   : > { %700 = vmatmul.mubr.bf16.gmra.mrb[16].mxu0 %v1828_v54 }
  0xb0   : > { %707 = vmatprep.mubr.bf16.mxu0 %v1832_v55 }
  0xb7   : > { %708 = vmatmul.mubr.bf16.gmra.mrb[20].mxu0 %v1831_v58  ;;  %v847_v58 = vadd.s32 8, %v2796_v49 }
  0xb8   : > { %715 = vmatprep.mubr.bf16.mxu0 %v1835_v59 }
  0xb9   : > { %v873_v11 = vand.u32 15, %v847_v58 }
  0xbb   : > { %vm2824_vm2 = vcmp.ne.s32.totalorder %v873_v11, 15 }
  0xbc   : > { %vm1913_vm4 = vmpackc.low %vm2824_vm2, %vm2481_vm3 }
  0xbf   : > { %716 = vmatmul.mubr.bf16.gmra.mrb[24].mxu0 %v1834_v62 }
  0xc0   : > { %723 = vmatprep.mubr.bf16.mxu0 %v1838_v63 }
  0xc7   : > { %724 = vmatmul.mubr.bf16.gmra.mrb[28].mxu0 %v1837_v0 }
 0x162   : > { %v1959_v26 = vpop.f32.mrb[0].mxu0 }
 0x163   : > { %v1960_v27 = vpop.f32.mrb[1].mxu0 }
 0x164   : > { %v1961_v31 = vadd.f32 %v1960_v27, %v1959_v26  ;;  %v1962_v32 = vpop.f32.mrb[2].mxu0  ;;  %v2121_v36 = vpop.f32.mrb[0].mxu1 }
 0x165   : > { %v1963_v33 = vpop.f32.mrb[3].mxu0  ;;  %v766_v40 = vpop.f32.mrb[1].mxu1 }
 0x166   : > { %v1964_v38 = vadd.f32 %v1963_v33, %v1962_v32  ;;  %v670_v39 = vadd.f32 %v1961_v31, %v2792_v30  ;;  %v2122_v43 = vpop.f32.mrb[2].mxu1 }
 0x167   : > { %v769_v46 = vpop.f32.mrb[3].mxu1 }
 0x168   : > { %v767_v44 = vadd.f32 %v766_v40, %v670_v39  ;;  %v673_v45 = vadd.f32 %v1964_v38, %v2792_v30 }
 0x16a   : > { %v2798_v50 = vmax.f32 %v767_v44, 0.0  ;;  %v770_v51 = vadd.f32 %v769_v46, %v673_v45  ;;  %v1965_v54 = vpop.f32.mrb[4].mxu0  ;;  %v887_v45 = vand.u32 15, %v849_v24 }
 0x16b   : > { %v1966_v55 = vpop.f32.mrb[5].mxu0 }
 0x16c   : > { %v830_v59 = vmax.f32 %v770_v51, 0.0  ;;  %v1967_v62 = vadd.f32 %v1966_v55, %v1965_v54  ;;  %v1968_v63 = vpop.f32.mrb[6].mxu0  ;;  %v3252_v0 = vrot.slane %v2798_v50, 7  ;;  %v3251_v1 = vrot.slane %v2798_v50, 1  ;;  %v2804_v3 = vpop.f32.mrb[4].mxu1 }
 0x16d   : > { %v1969_v2 = vpop.f32.mrb[7].mxu0  ;;  %v782_v8 = vpop.f32.mrb[5].mxu1  ;;  %vm1122_vm5 = vcmp.ne.s32.totalorder %v887_v45, 15 }
 0x16e   : > { %v1071_v4 = vrot.slane %v830_v59, 7  ;;  %v1136_v5 = vrot.slane %v830_v59, 1  ;;  %v678_v6 = vadd.f32 %v1967_v62, %v2792_v30  ;;  %v1970_v7 = vadd.f32 %v1969_v2, %v1968_v63  ;;  %v2809_v10 = vpop.f32.mrb[6].mxu1  ;;  %vm1916_vm6 = vmpackc.low %vm1122_vm5, %vm2481_vm3 }
 0x16f   : > { %v1192_v9 = vpack.c.bf16 %v830_v59, %v2798_v50  ;;  %v785_v15 = vpop.f32.mrb[7].mxu1  ;;  %v851_v2 = vadd.s32 40, %v2796_v49 }
 0x170   : > { %v2815_v12 = vsel %vm1086_vm0, %v3252_v0, %v1071_v4  ;;  %v775_v13 = vadd.f32 %v2121_v36, %v678_v6  ;;  %v681_v14 = vadd.f32 %v1970_v7, %v2792_v30  ;;  %v1166_v16 = vsel %vm1151_vm1, %v3251_v1, %v1136_v5 }
 0x171   : > { %1487 = vmatprep.mubr.bf16.mxu1 %v1192_v9  ;;  %v861_v1 = vadd.s32 120, %v2796_v49 }
 0x172   : > { %v2822_v17 = vmax.f32 %v775_v13, 0.0  ;;  %v778_v18 = vadd.f32 %v2122_v43, %v681_v14  ;;  %v1971_v19 = vpop.f32.mrb[8].mxu0 }
 0x173   : > { %v1972_v20 = vpop.f32.mrb[9].mxu0 }
 0x174   : > { %v1072_v25 = vrot.slane %v2822_v17, 7  ;;  %v1137_v26 = vrot.slane %v2822_v17, 1  ;;  %v2831_v27 = vmax.f32 %v778_v18, 0.0  ;;  %v1973_v31 = vadd.f32 %v1972_v20, %v1971_v19  ;;  %v1974_v32 = vpop.f32.mrb[10].mxu0  ;;  %v2833_v36 = vpop.f32.mrb[8].mxu1 }
 0x175   : > { %v1975_v33 = vpop.f32.mrb[11].mxu0  ;;  %v2838_v43 = vpop.f32.mrb[9].mxu1  ;;  %v901_v20 = vand.u32 15, %v851_v2 }
 0x176   : > { %v1073_v37 = vrot.slane %v2831_v27, 7  ;;  %v1138_v38 = vrot.slane %v2831_v27, 1  ;;  %v1976_v39 = vadd.f32 %v1975_v33, %v1974_v32  ;;  %v686_v40 = vadd.f32 %v1973_v31, %v2792_v30  ;;  %v2845_v46 = vpop.f32.mrb[10].mxu1 }
 0x177   : > { %v1165_v44 = vsel %vm1151_vm1, %v1136_v5, %v1137_v26  ;;  %v2851_v54 = vsel %vm1086_vm0, %v1071_v4, %v1072_v25  ;;  %v2856_v63 = vpop.f32.mrb[11].mxu1  ;;  %vm1124_vm7 = vcmp.ne.s32.totalorder %v901_v20, 15 }
 0x178   : > { %v783_v55 = vadd.f32 %v782_v8, %v686_v40  ;;  %v1164_v58 = vsel %vm1151_vm1, %v1137_v26, %v1138_v38  ;;  %v689_v59 = vadd.f32 %v1976_v39, %v2792_v30  ;;  %v1914_v62 = vpack.c.bf16 %v1165_v44, %v1166_v16  ;;  %vm1919_vm8 = vmpackc.low %vm1124_vm7, %vm2481_vm3 }
 0x179   : > { %v2861_v5 = vsel %vm1086_vm0, %v1072_v25, %v1073_v37 }
 0x17a   : > { %v2863_v6 = vmax.f32 %v783_v55, 0.0  ;;  %v786_v7 = vadd.f32 %v785_v15, %v689_v59  ;;  %2151 = vmatprep.mubr.msk.bf16.mxu0 %vm1913_vm4, %v1914_v62  ;;  %v1977_v4 = vpop.f32.mrb[12].mxu0  ;;  %v853_v62 = vadd.s32 56, %v2796_v49 }
 0x17b   : > { %v1978_v9 = vpop.f32.mrb[13].mxu0 }
 0x17c   : > { %v1074_v11 = vrot.slane %v2863_v6, 7  ;;  %v1139_v13 = vrot.slane %v2863_v6, 1  ;;  %v2869_v14 = vmax.f32 %v786_v7, 0.0  ;;  %v1979_v16 = vadd.f32 %v1978_v9, %v1977_v4  ;;  %v1980_v18 = vpop.f32.mrb[14].mxu0  ;;  %v2871_v23 = vpop.f32.mrb[12].mxu1 }
 0x17d   : > { %v1981_v19 = vpop.f32.mrb[15].mxu0  ;;  %v2879_v31 = vpop.f32.mrb[13].mxu1 }
 0x17e   : > { %v1163_v15 = vsel %vm1151_vm1, %v1138_v38, %v1139_v13  ;;  %v1075_v24 = vrot.slane %v2869_v14, 7  ;;  %v1140_v25 = vrot.slane %v2869_v14, 1  ;;  %v694_v26 = vadd.f32 %v1979_v16, %v2792_v30  ;;  %v2881_v39 = vpop.f32.mrb[14].mxu1 }
 0x17f   : > { %v1917_v32 = vpack.c.bf16 %v1163_v15, %v1164_v58  ;;  %v1982_v33 = vadd.f32 %v1981_v19, %v1980_v18  ;;  %v2887_v38 = vsel %vm1086_vm0, %v1073_v37, %v1074_v11  ;;  %v2892_v55 = vpop.f32.mrb[15].mxu1  ;;  %v915_v15 = vand.u32 15, %v853_v62 }
 0x180   : > { %v791_v44 = vadd.f32 %v2804_v3, %v694_v26  ;;  %v1162_v45 = vsel %vm1151_vm1, %v1139_v13, %v1140_v25  ;;  %v2896_v58 = vsel %vm1086_vm0, %v1074_v11, %v1075_v24 }
 0x181   : > { %v697_v59 = vadd.f32 %v1982_v33, %v2792_v30  ;;  %2152 = vmatmul.mubr.msk.bf16.vlgmr.msra.gmra.mrb[32].mxu0 %vm1916_vm6, %v1917_v32  ;;  %vm1126_vm9 = vcmp.ne.s32.totalorder %v915_v15, 15 }
 0x182   : > { %v2902_v2 = vmax.f32 %v791_v44, 0.0  ;;  %v1983_v3 = vpop.f32.mrb[16].mxu0  ;;  %vm1922_vm10 = vmpackc.low %vm1126_vm9, %vm2481_vm3 }
 0x183   : > { %v794_v7 = vadd.f32 %v2809_v10, %v697_v59  ;;  %v1984_v4 = vpop.f32.mrb[17].mxu0 }
 0x184   : > { %v1076_v9 = vrot.slane %v2902_v2, 7  ;;  %v1141_v11 = vrot.slane %v2902_v2, 1  ;;  %v1985_v13 = vadd.f32 %v1984_v4, %v1983_v3  ;;  %v1986_v16 = vpop.f32.mrb[18].mxu0 }
 0x185   : > { %v2907_v18 = vmax.f32 %v794_v7, 0.0  ;;  %v1987_v19 = vpop.f32.mrb[19].mxu0 }
 0x186   : > { %v1988_v26 = vadd.f32 %v1987_v19, %v1986_v16  ;;  %v702_v32 = vadd.f32 %v1985_v13, %v2792_v30  ;;  %v1161_v33 = vsel %vm1151_vm1, %v1140_v25, %v1141_v11  ;;  %v2915_v10 = vsel %vm1086_vm0, %v1075_v24, %v1076_v9 }
 0x187   : > { %v1077_v20 = vrot.slane %v2907_v18, 7  ;;  %v1142_v44 = vrot.slane %v2907_v18, 1  ;;  %v1920_v59 = vpack.c.bf16 %v1161_v33, %v1162_v45 }
 0x188   : > { %v799_v3 = vadd.f32 %v2838_v43, %v702_v32  ;;  %v705_v7 = vadd.f32 %v1988_v26, %v2792_v30  ;;  %v855_v43 = vadd.s32 72, %v2796_v49 }
 0x189   : > { %2155 = vmatprep.mubr.msk.bf16.mxu0 %vm1919_vm8, %v1920_v59  ;;  %v1160_v25 = vsel %vm1151_vm1, %v1141_v11, %v1142_v44  ;;  %v2927_v24 = vsel %vm1086_vm0, %v1076_v9, %v1077_v20 }
 0x18a   : > { %v2929_v4 = vmax.f32 %v799_v3, 0.0  ;;  %v802_v13 = vadd.f32 %v2856_v63, %v705_v7  ;;  %v1989_v45 = vpop.f32.mrb[20].mxu0  ;;  %v929_v62 = vand.u32 15, %v855_v43 }
 0x18b   : > { %v1990_v19 = vpop.f32.mrb[21].mxu0 }
 0x18c   : > { %v1078_v26 = vrot.slane %v2929_v4, 7  ;;  %v1143_v11 = vrot.slane %v2929_v4, 1  ;;  %v2937_v32 = vmax.f32 %v802_v13, 0.0  ;;  %v1991_v9 = vadd.f32 %v1990_v19, %v1989_v45  ;;  %v1992_v33 = vpop.f32.mrb[22].mxu0 }
 0x18d   : > { %v1993_v59 = vpop.f32.mrb[23].mxu0  ;;  %vm1128_vm11 = vcmp.ne.s32.totalorder %v929_v62, 15 }
 0x18e   : > { %v1079_v3 = vrot.slane %v2937_v32, 7  ;;  %v1144_v63 = vrot.slane %v2937_v32, 1  ;;  %v710_v7 = vadd.f32 %v1991_v9, %v2792_v30  ;;  %v1994_v16 = vadd.f32 %v1993_v59, %v1992_v33  ;;  %vm1925_vm12 = vmpackc.low %vm1128_vm11, %vm2481_vm3 }
 0x18f   : > { %v1159_v15 = vsel %vm1151_vm1, %v1142_v44, %v1143_v11  ;;  %v2949_v45 = vsel %vm1086_vm0, %v1077_v20, %v1078_v26 }
 0x190   : > { %v807_v19 = vadd.f32 %v2833_v36, %v710_v7  ;;  %v713_v37 = vadd.f32 %v1994_v16, %v2792_v30  ;;  %v1923_v40 = vpack.c.bf16 %v1159_v15, %v1160_v25  ;;  %v1158_v9 = vsel %vm1151_vm1, %v1143_v11, %v1144_v63 }
 0x191   : > { %v2957_v44 = vsel %vm1086_vm0, %v1078_v26, %v1079_v3  ;;  %v857_v25 = vadd.s32 88, %v2796_v49 }
 0x192   : > { %v2959_v43 = vmax.f32 %v807_v19, 0.0  ;;  %v810_v33 = vadd.f32 %v2845_v46, %v713_v37  ;;  %2156 = vmatmul.mubr.msk.bf16.gmra.mrb[36].mxu0 %vm1922_vm10, %v1923_v40  ;;  %v1995_v59 = vpop.f32.mrb[24].mxu0 }
 0x193   : > { %v1996_v36 = vpop.f32.mrb[25].mxu0  ;;  %v943_v13 = vand.u32 15, %v857_v25 }
 0x194   : > { %v1080_v16 = vrot.slane %v2959_v43, 7  ;;  %v1145_v11 = vrot.slane %v2959_v43, 1  ;;  %v2967_v7 = vmax.f32 %v810_v33, 0.0  ;;  %v1997_v26 = vadd.f32 %v1996_v36, %v1995_v59  ;;  %v1998_v15 = vpop.f32.mrb[26].mxu0 }
 0x195   : > { %v1999_v19 = vpop.f32.mrb[27].mxu0  ;;  %vm1130_vm13 = vcmp.ne.s32.totalorder %v943_v13, 15 }
 0x196   : > { %v1081_v46 = vrot.slane %v2967_v7, 7  ;;  %v1146_v40 = vrot.slane %v2967_v7, 1  ;;  %v2000_v37 = vadd.f32 %v1999_v19, %v1998_v15  ;;  %v718_v20 = vadd.f32 %v1997_v26, %v2792_v30  ;;  %vm1928_vm14 = vmpackc.low %vm1130_vm13, %vm2481_vm3 }
 0x197   : > { %v1157_v62 = vsel %vm1151_vm1, %v1144_v63, %v1145_v11  ;;  %v2979_v59 = vsel %vm1086_vm0, %v1079_v3, %v1080_v16  ;;  %v859_v63 = vadd.s32 104, %v2796_v49 }
 0x198   : > { %v815_v36 = vadd.f32 %v2879_v31, %v718_v20  ;;  %v721_v8 = vadd.f32 %v2000_v37, %v2792_v30  ;;  %v1926_v15 = vpack.c.bf16 %v1157_v62, %v1158_v9  ;;  %v1156_v26 = vsel %vm1151_vm1, %v1145_v11, %v1146_v40 }
 0x199   : > { %v2988_v25 = vsel %vm1086_vm0, %v1080_v16, %v1081_v46 }
 0x19a   : > { %v2990_v19 = vmax.f32 %v815_v36, 0.0  ;;  %v818_v33 = vadd.f32 %v2892_v55, %v721_v8  ;;  %2159 = vmatprep.mubr.msk.bf16.mxu0 %vm1925_vm12, %v1926_v15  ;;  %v2001_v3 = vpop.f32.mrb[28].mxu0  ;;  %v957_v36 = vand.u32 15, %v859_v63 }
 0x19b   : > { %v2002_v20 = vpop.f32.mrb[29].mxu0 }
 0x19c   : > { %v1082_v9 = vrot.slane %v2990_v19, 7  ;;  %v1147_v11 = vrot.slane %v2990_v19, 1  ;;  %v2997_v37 = vmax.f32 %v818_v33, 0.0  ;;  %v2003_v62 = vadd.f32 %v2002_v20, %v2001_v3  ;;  %v2004_v16 = vpop.f32.mrb[30].mxu0 }
 0x19d   : > { %v2005_v51 = vpop.f32.mrb[31].mxu0  ;;  %v866_v33 = vand.u32 15, %v2796_v49  ;;  %vm1132_vm15 = vcmp.ne.s32.totalorder %v957_v36, 15 }
 0x19e   : > { %v1083_v8 = vrot.slane %v2997_v37, 7  ;;  %v1148_v55 = vrot.slane %v2997_v37, 1  ;;  %v726_v15 = vadd.f32 %v2003_v62, %v2792_v30  ;;  %v2006_v31 = vadd.f32 %v2005_v51, %v2004_v16  ;;  %vm1931_vm5 = vmpackc.low %vm1132_vm15, %vm2481_vm3 }
 0x19f   : > { %v1155_v13 = vsel %vm1151_vm1, %v1146_v40, %v1147_v11  ;;  %v3011_v63 = vsel %vm1086_vm0, %v1081_v46, %v1082_v9  ;;  %v971_v40 = vand.u32 15, %v861_v1  ;;  %vm1054_vm2 = vcmp.ne.s32.totalorder %v866_v33, 0 }
 0x1a0   : > { %v823_v20 = vadd.f32 %v2871_v23, %v726_v15  ;;  %v729_v0 = vadd.f32 %v2006_v31, %v2792_v30  ;;  %v1929_v62 = vpack.c.bf16 %v1155_v13, %v1156_v26  ;;  %v1154_v51 = vsel %vm1151_vm1, %v1147_v11, %v1148_v55  ;;  %vm1889_vm6 = vmpackc.low %vm2481_vm3, %vm1054_vm2 }
 0x1a1   : > { %v3019_v16 = vsel %vm1086_vm0, %v1082_v9, %v1083_v8  ;;  %vm1134_vm4 = vcmp.ne.s32.totalorder %v971_v40, 15  ;;  %v848_v1 = vadd.s32 16, %v2796_v49  ;;  %v3267_v15 = vrot.slane %v2798_v50, 7 }
 0x1a2   : > { %v3021_v61 = vmax.f32 %v823_v20, 0.0  ;;  %v826_v3 = vadd.f32 %v2881_v39, %v729_v0  ;;  %2160 = vmatmul.mubr.msk.bf16.gmra.mrb[40].mxu0 %vm1928_vm14, %v1929_v62  ;;  %v1908_v46 = vpack.c.bf16 %v3019_v16, %v3011_v63  ;;  %vm1934_vm7 = vmpackc.low %vm1134_vm4, %vm2481_vm3  ;;  %v3269_v40 = vpack.c.bf16 %v2831_v27, %v2822_v17 }
 0x1a3   : > { %v880_v62 = vand.u32 15, %v848_v1  ;;  %v3272_v27 = vpack.c.bf16 %v2896_v58, %v2887_v38  ;;  %v3273_v1 = vpack.c.bf16 %v2907_v18, %v2902_v2  ;;  %v856_v38 = vadd.s32 80, %v2796_v49 }
 0x1a4   : > { %v1084_v30 = vrot.slane %v3021_v61, 7  ;;  %v1149_v23 = vrot.slane %v3021_v61, 1  ;;  %v844_v26 = vmax.f32 %v826_v3, 0.0  ;;  %v3276_v2 = vpack.c.bf16 %v2957_v44, %v2949_v45 }
 0x1a5   : > { %vm1056_vm8 = vcmp.ne.s32.totalorder %v880_v62, 0  ;;  %v936_v58 = vand.u32 15, %v856_v38  ;;  %v3277_v18 = vpack.c.bf16 %v2967_v7, %v2959_v43  ;;  %v860_v45 = vadd.s32 112, %v2796_v49 }
 0x1a6   : > { %v1085_v31 = vrot.slane %v844_v26, 7  ;;  %v1150_v9 = vrot.slane %v844_v26, 1  ;;  %v1153_v11 = vsel %vm1151_vm1, %v1148_v55, %v1149_v23  ;;  %v1199_v0 = vpack.c.bf16 %v844_v26, %v3021_v61 }
 0x1a7   : > { %v1932_v39 = vpack.c.bf16 %v1153_v11, %v1154_v51  ;;  %v1088_v36 = vsel %vm1086_vm0, %v1083_v8, %v1084_v30  ;;  %v3268_v55 = vrot.slane %v2798_v50, 1  ;;  %v850_v50 = vadd.s32 32, %v2796_v49 }
 0x1a8   : > { %v1102_v13 = vsel %vm1086_vm0, %v1085_v31, %v3267_v15  ;;  %v1152_v33 = vsel %vm1151_vm1, %v1149_v23, %v1150_v9  ;;  %v1087_v61 = vsel %vm1086_vm0, %v1084_v30, %v1085_v31  ;;  %v3270_v30 = vpack.c.bf16 %v2861_v5, %v2851_v54 }
 0x1a9   : > { %v1167_v3 = vsel %vm1151_vm1, %v1150_v9, %v3268_v55  ;;  %v1890_v8 = vpack.c.bf16 %v2815_v12, %v1102_v13  ;;  %2163 = vmatprep.mubr.msk.bf16.mxu0 %vm1931_vm5, %v1932_v39  ;;  %v1911_v51 = vpack.c.bf16 %v1087_v61, %v1088_v36  ;;  %vm1892_vm1 = vmpackc.low %vm2481_vm3, %vm1056_vm8  ;;  %v894_v23 = vand.u32 15, %v850_v50  ;;  %v3121_v36 = vld [vmem:[%s3246_s4] ss:$0 sm:$0xff] }
 0x1aa   : > { %v1935_v20 = vpack.c.bf16 %v1167_v3, %v1152_v33  ;;  %v3271_v12 = vpack.c.bf16 %v2869_v14, %v2863_v6  ;;  %v852_v26 = vadd.s32 48, %v2796_v49  ;;  %v854_v54 = vadd.s32 64, %v2796_v49 }
 0x1ab   : > { %1891 = vmatmul.mubr.msk.bf16.vlgmr.msra.gmra.mrb[16].mxu1 %vm1889_vm6, %v1890_v8  ;;  %vm1058_vm0 = vcmp.ne.s32.totalorder %v894_v23, 0  ;;  %v3274_v6 = vpack.c.bf16 %v2927_v24, %v2915_v10  ;;  %v3275_v14 = vpack.c.bf16 %v2937_v32, %v2929_v4  ;;  %vm1064_vm14 = vcmp.ne.s32.totalorder %v936_v58, 0 }
 0x1ac   : > { %2164 = vmatmul.mubr.msk.bf16.gmra.mrb[44].mxu0 %vm1934_vm7, %v1935_v20  ;;  %1495 = vmatprep.mubr.bf16.mxu1 %v3269_v40  ;;  %vm1895_vm9 = vmpackc.low %vm2481_vm3, %vm1058_vm0  ;;  %v908_v17 = vand.u32 15, %v852_v26  ;;  %v922_v5 = vand.u32 15, %v854_v54  ;;  %v858_v10 = vadd.s32 96, %v2796_v49  ;;  %v3278_v4 = vpack.c.bf16 %v2988_v25, %v2979_v59 }
 0x1ad   : > { %vm1904_vm15 = vmpackc.low %vm2481_vm3, %vm1064_vm14  ;;  %v3279_v32 = vpack.c.bf16 %v2997_v37, %v2990_v19  ;;  %v964_v44 = vand.u32 15, %v860_v45  ;;  %v1256_v11 = vrot.slane %v2702_v21, 4  ;;  %v1257_v33 = vrot.slane %v2705_v22, 4 }
 0x1ae   : > { %vm1060_vm10 = vcmp.ne.s32.totalorder %v908_v17, 0  ;;  %vm1062_vm12 = vcmp.ne.s32.totalorder %v922_v5, 0  ;;  %v950_v24 = vand.u32 15, %v858_v10 }
 0x1af   : > { %vm1898_vm11 = vmpackc.low %vm2481_vm3, %vm1060_vm10  ;;  %vm1068_vm5 = vcmp.ne.s32.totalorder %v964_v44, 0  ;;  %v1288_v20 = vunpack.c.l.bf16 %v1256_v11  ;;  %v1289_v40 = vunpack.c.l.bf16 %v1257_v33 }
 0x1b0   : > { %vm1901_vm13 = vmpackc.low %vm2481_vm3, %vm1062_vm12  ;;  %vm1066_vm2 = vcmp.ne.s32.totalorder %v950_v24, 0  ;;  %v1260_v24 = vrot.slane %v2723_v34, 4 }
 0x1b1   : > { %vm1907_vm4 = vmpackc.low %vm2481_vm3, %vm1066_vm2 }
 0x1b2   : > { %vm1910_vm6 = vmpackc.low %vm2481_vm3, %vm1068_vm5 }
 0x1b3   : > { %1894 = vmatmul.mubr.msk.bf16.gmra.mrb[20].mxu1 %vm1892_vm1, %v3270_v30  ;;  %v1258_v30 = vrot.slane %v2711_v28, 4 }
 0x1b4   : > { %1503 = vmatprep.mubr.bf16.mxu1 %v3271_v12 }
 0x1b5   : > { %v1290_v58 = vunpack.c.l.bf16 %v1258_v30 }
 0x1bb   : > { %1897 = vmatmul.mubr.msk.bf16.gmra.mrb[24].mxu1 %vm1895_vm9, %v3272_v27  ;;  %v1259_v27 = vrot.slane %v2714_v29, 4 }
 0x1bc   : > { %1511 = vmatprep.mubr.bf16.mxu1 %v3273_v1 }
 0x1bd   : > { %v1291_v10 = vunpack.c.l.bf16 %v1259_v27 }
 0x1c3   : > { %1900 = vmatmul.mubr.msk.bf16.gmra.mrb[28].mxu1 %vm1898_vm11, %v3274_v6 }
 0x1c4   : > { %1519 = vmatprep.mubr.bf16.mxu1 %v3275_v14 }
 0x1cb   : > { %1903 = vmatmul.mubr.msk.bf16.gmra.mrb[32].mxu1 %vm1901_vm13, %v3276_v2 }
 0x1cc   : > { %1527 = vmatprep.mubr.bf16.mxu1 %v3277_v18 }
 0x1d3   : > { %1906 = vmatmul.mubr.msk.bf16.gmra.mrb[36].mxu1 %vm1904_vm15, %v3278_v4 }
 0x1d4   : > { %1535 = vmatprep.mubr.bf16.mxu1 %v3279_v32 }
 0x1db   : > { %1909 = vmatmul.mubr.msk.bf16.gmra.mrb[40].mxu1 %vm1907_vm4, %v1908_v46 }
 0x1dc   : > { %1543 = vmatprep.mubr.bf16.mxu1 %v1199_v0 }
 0x1e3   : > { %1912 = vmatmul.mubr.msk.bf16.gmra.mrb[44].mxu1 %vm1910_vm6, %v1911_v51 }
 0x254   : > { %v2153_v43 = vpop.f32.mrb[32].mxu0 }
 0x255   : > { %v1586_v7 = vpop.f32.mrb[33].mxu0 }
 0x256   : > { %v2154_v59 = vpop.f32.mrb[34].mxu0 }
 0x257   : > { %v1589_v25 = vpop.f32.mrb[35].mxu0 }
 0x265   : > { %v3099_v19 = vpop.f32.mrb[36].mxu0 }
 0x266   : > { %v3101_v37 = vpop.f32.mrb[37].mxu0 }
 0x267   : > { %v3103_v49 = vpop.f32.mrb[38].mxu0 }
 0x268   : > { %v3105_v31 = vpop.f32.mrb[39].mxu0 }
 0x275   : > { %v3107_v9 = vpop.f32.mrb[40].mxu0 }
 0x276   : > { %v3109_v63 = vpop.f32.mrb[41].mxu0 }
 0x277   : > { %v3111_v16 = vpop.f32.mrb[42].mxu0 }
 0x278   : > { %v3113_v46 = vpop.f32.mrb[43].mxu0 }
 0x27e   : > { %v2039_v0 = vpop.f32.mrb[16].mxu1 }
 0x27f   : > { %v3116_v39 = vpop.f32.mrb[44].mxu0  ;;  %v2040_v15 = vpop.f32.mrb[17].mxu1 }
 0x280   : > { %v3123_v13 = vpop.f32.mrb[45].mxu0  ;;  %v2041_v55 = vadd.f32 %v2040_v15, %v2039_v0  ;;  %v2042_v3 = vpop.f32.mrb[18].mxu1 }
 0x281   : > { %v3126_v61 = vpop.f32.mrb[46].mxu0  ;;  %v2043_v8 = vpop.f32.mrb[19].mxu1 }
 0x282   : > { %v3128_v21 = vpop.f32.mrb[47].mxu0  ;;  %v1490_v62 = vadd.f32 %v2041_v55, %v3121_v36  ;;  %v2044_v51 = vadd.f32 %v2043_v8, %v2042_v3 }
 0x284   : > { %v1587_v50 = vadd.f32 %v1586_v7, %v1490_v62  ;;  %v1493_v23 = vadd.f32 %v2044_v51, %v3121_v36  ;;  %v1261_v7 = vrot.slane %v2726_v35, 4  ;;  %v1262_v35 = vrot.slane %v2735_v41, 4 }
 0x286   : > { %v1649_v12 = vadd.f32 %v1587_v50, %v1288_v20  ;;  %v1590_v22 = vadd.f32 %v1589_v25, %v1493_v23  ;;  %v2045_v26 = vpop.f32.mrb[20].mxu1  ;;  %v1263_v23 = vrot.slane %v2738_v42, 4  ;;  %v1294_v27 = vunpack.c.l.bf16 %v1262_v35 }
 0x287   : > { %v2046_v17 = vpop.f32.mrb[21].mxu1  ;;  %v1264_v42 = vrot.slane %v2747_v47, 4 }
 0x288   : > { %v1665_v1 = vmax.f32 %v1649_v12, 0.0  ;;  %v1650_v54 = vadd.f32 %v1590_v22, %v1289_v40  ;;  %v2047_v5 = vadd.f32 %v2046_v17, %v2045_v26  ;;  %v2048_v6 = vpop.f32.mrb[22].mxu1 }
 0x289   : > { %v2049_v14 = vpop.f32.mrb[23].mxu1 }
 0x28a   : > { %1681 = vst [vmem:[%s3135_s28] sm:$0xff] %v1665_v1  ;;  %v1666_v38 = vmax.f32 %v1650_v54, 0.0  ;;  %v1498_v28 = vadd.f32 %v2047_v5, %v3121_v36  ;;  %v2050_v2 = vadd.f32 %v2049_v14, %v2048_v6 }
 0x28c   : > { %1682 = vst [vmem:[%s3135_s28 + $0x8] sm:$0xff] %v1666_v38  ;;  %v1595_v18 = vadd.f32 %v2153_v43, %v1498_v28  ;;  %v1501_v29 = vadd.f32 %v2050_v2, %v3121_v36  ;;  %v1292_v43 = vunpack.c.l.bf16 %v1260_v24  ;;  %v1265_v28 = vrot.slane %v2750_v48, 4 }
 0x28d   : > { %v1266_v48 = vrot.slane %v2758_v52, 4 }
 0x28e   : > { %v1651_v4 = vadd.f32 %v1595_v18, %v1290_v58  ;;  %v1598_v32 = vadd.f32 %v2154_v59, %v1501_v29  ;;  %v2051_v45 = vpop.f32.mrb[24].mxu1  ;;  %v1293_v59 = vunpack.c.l.bf16 %v1261_v7 }
 0x28f   : > { %v2052_v44 = vpop.f32.mrb[25].mxu1 }
 0x290   : > { %v1667_v25 = vmax.f32 %v1651_v4, 0.0  ;;  %v1652_v11 = vadd.f32 %v1598_v32, %v1291_v10  ;;  %v2053_v0 = vadd.f32 %v2052_v44, %v2051_v45  ;;  %v2054_v15 = vpop.f32.mrb[26].mxu1  ;;  %v1296_v4 = vunpack.c.l.bf16 %v1264_v42 }
 0x291   : > { %v2055_v33 = vpop.f32.mrb[27].mxu1 }
 0x292   : > { %1683 = vst [vmem:[%s3135_s28 + $0x10] sm:$0xff] %v1667_v25  ;;  %v1668_v55 = vmax.f32 %v1652_v11, 0.0  ;;  %v1506_v3 = vadd.f32 %v2053_v0, %v3121_v36  ;;  %v2056_v8 = vadd.f32 %v2055_v33, %v2054_v15  ;;  %v1267_v15 = vrot.slane %v2761_v53, 4 }
 0x293   : > { %v1268_v53 = vrot.slane %v2768_v56, 4 }
 0x294   : > { %1684 = vst [vmem:[%s3135_s28 + $0x18] sm:$0xff] %v1668_v55  ;;  %v1603_v34 = vadd.f32 %v3101_v37, %v1506_v3  ;;  %v1509_v20 = vadd.f32 %v2056_v8, %v3121_v36 }
 0x296   : > { %v1653_v62 = vadd.f32 %v1603_v34, %v1292_v43  ;;  %v1606_v51 = vadd.f32 %v3105_v31, %v1509_v20  ;;  %v2057_v40 = vpop.f32.mrb[28].mxu1  ;;  %v1295_v31 = vunpack.c.l.bf16 %v1263_v23  ;;  %v1298_v34 = vunpack.c.l.bf16 %v1266_v48 }
 0x297   : > { %v2058_v50 = vpop.f32.mrb[29].mxu1  ;;  %v1269_v23 = vrot.slane %v2771_v57, 4  ;;  %v1270_v57 = vrot.slane %v2778_v60, 4 }
 0x298   : > { %v1669_v30 = vmax.f32 %v1653_v62, 0.0  ;;  %v1654_v12 = vadd.f32 %v1606_v51, %v1293_v59  ;;  %v2059_v22 = vadd.f32 %v2058_v50, %v2057_v40  ;;  %v2060_v26 = vpop.f32.mrb[30].mxu1 }
 0x299   : > { %v2061_v17 = vpop.f32.mrb[31].mxu1 }
 0x29a   : > { %1685 = vst [vmem:[%s3135_s28 + $0x20] sm:$0xff] %v1669_v30  ;;  %v1670_v37 = vmax.f32 %v1654_v12, 0.0  ;;  %v1514_v1 = vadd.f32 %v2059_v22, %v3121_v36  ;;  %v2062_v54 = vadd.f32 %v2061_v17, %v2060_v26 }
 0x29c   : > { %1686 = vst [vmem:[%s3135_s28 + $0x28] sm:$0xff] %v1670_v37  ;;  %v1611_v41 = vadd.f32 %v3099_v19, %v1514_v1  ;;  %v1517_v5 = vadd.f32 %v2062_v54, %v3121_v36  ;;  %v1300_v37 = vunpack.c.l.bf16 %v1268_v53 }
 0x29e   : > { %v1655_v6 = vadd.f32 %v1611_v41, %v1294_v27  ;;  %v1614_v14 = vadd.f32 %v3103_v49, %v1517_v5  ;;  %v2063_v38 = vpop.f32.mrb[32].mxu1  ;;  %v1297_v49 = vunpack.c.l.bf16 %v1265_v28 }
 0x29f   : > { %v2064_v58 = vpop.f32.mrb[33].mxu1 }
 0x2a0   : > { %v1671_v2 = vmax.f32 %v1655_v6, 0.0  ;;  %v1656_v18 = vadd.f32 %v1614_v14, %v1295_v31  ;;  %v2065_v10 = vadd.f32 %v2064_v58, %v2063_v38  ;;  %v2066_v29 = vpop.f32.mrb[34].mxu1  ;;  %v3280_v6 = vld [vmem:[#allocation12_spill] sm:$0xff] }
 0x2a1   : > { %v2067_v24 = vpop.f32.mrb[35].mxu1  ;;  %v1271_v14 = vrot.slane %v3280_v6, 4 }
 0x2a2   : > { %1687 = vst [vmem:[%s3135_s28 + $0x30] sm:$0xff] %v1671_v2  ;;  %v1672_v19 = vmax.f32 %v1656_v18, 0.0  ;;  %v1522_v32 = vadd.f32 %v2065_v10, %v3121_v36  ;;  %v2068_v45 = vadd.f32 %v2067_v24, %v2066_v29  ;;  %v1302_v10 = vunpack.c.l.bf16 %v1270_v57 }
 0x2a3   : > { %v1303_v24 = vunpack.c.l.bf16 %v1271_v14 }
 0x2a4   : > { %1688 = vst [vmem:[%s3135_s28 + $0x38] sm:$0xff] %v1672_v19  ;;  %v1619_v47 = vadd.f32 %v3109_v63, %v1522_v32  ;;  %v1525_v44 = vadd.f32 %v2068_v45, %v3121_v36 }
 0x2a6   : > { %v1657_v7 = vadd.f32 %v1619_v47, %v1296_v4  ;;  %v1622_v25 = vadd.f32 %v3113_v46, %v1525_v44  ;;  %v2069_v11 = vpop.f32.mrb[36].mxu1  ;;  %v1299_v46 = vunpack.c.l.bf16 %v1267_v15 }
 0x2a7   : > { %v2070_v0 = vpop.f32.mrb[37].mxu1 }
 0x2a8   : > { %v1673_v33 = vmax.f32 %v1657_v7, 0.0  ;;  %v1658_v55 = vadd.f32 %v1622_v25, %v1297_v49  ;;  %v2071_v43 = vadd.f32 %v2070_v0, %v2069_v11  ;;  %v2072_v3 = vpop.f32.mrb[38].mxu1 }
 0x2a9   : > { %v2073_v8 = vpop.f32.mrb[39].mxu1 }
 0x2aa   : > { %1689 = vst [vmem:[%s3135_s28 + $0x40] sm:$0xff] %v1673_v33  ;;  %v1674_v63 = vmax.f32 %v1658_v55, 0.0  ;;  %v1530_v59 = vadd.f32 %v2071_v43, %v3121_v36  ;;  %v2074_v20 = vadd.f32 %v2073_v8, %v2072_v3 }
 0x2ac   : > { %1690 = vst [vmem:[%s3135_s28 + $0x48] sm:$0xff] %v1674_v63  ;;  %v1627_v52 = vadd.f32 %v3107_v9, %v1530_v59  ;;  %v1533_v35 = vadd.f32 %v2074_v20, %v3121_v36 }
 0x2ae   : > { %v1659_v62 = vadd.f32 %v1627_v52, %v1298_v34  ;;  %v1630_v51 = vadd.f32 %v3111_v16, %v1533_v35  ;;  %v2075_v40 = vpop.f32.mrb[40].mxu1  ;;  %v1301_v16 = vunpack.c.l.bf16 %v1269_v23 }
 0x2af   : > { %v2076_v50 = vpop.f32.mrb[41].mxu1 }
 0x2b0   : > { %v1675_v30 = vmax.f32 %v1659_v62, 0.0  ;;  %v1660_v12 = vadd.f32 %v1630_v51, %v1299_v46  ;;  %v2077_v22 = vadd.f32 %v2076_v50, %v2075_v40  ;;  %v2078_v26 = vpop.f32.mrb[42].mxu1 }
 0x2b1   : > { %v2079_v17 = vpop.f32.mrb[43].mxu1 }
 0x2b2   : > { %1691 = vst [vmem:[%s3135_s28 + $0x50] sm:$0xff] %v1675_v30  ;;  %v1676_v9 = vmax.f32 %v1660_v12, 0.0  ;;  %v1538_v27 = vadd.f32 %v2077_v22, %v3121_v36  ;;  %v2080_v1 = vadd.f32 %v2079_v17, %v2078_v26 }
 0x2b4   : > { %1692 = vst [vmem:[%s3135_s28 + $0x58] sm:$0xff] %v1676_v9  ;;  %v1635_v56 = vadd.f32 %v3123_v13, %v1538_v27  ;;  %v1541_v54 = vadd.f32 %v2080_v1, %v3121_v36 }
 0x2b6   : > { %v1661_v41 = vadd.f32 %v1635_v56, %v1300_v37  ;;  %v1638_v31 = vadd.f32 %v3128_v21, %v1541_v54  ;;  %v2081_v5 = vpop.f32.mrb[44].mxu1 }
 0x2b7   : > { %v2082_v42 = vpop.f32.mrb[45].mxu1 }
 0x2b8   : > { %v1677_v38 = vmax.f32 %v1661_v41, 0.0  ;;  %v1662_v58 = vadd.f32 %v1638_v31, %v1301_v16  ;;  %v2083_v28 = vadd.f32 %v2082_v42, %v2081_v5  ;;  %v2084_v2 = vpop.f32.mrb[46].mxu1 }
 0x2b9   : > { %v2085_v13 = vpop.f32.mrb[47].mxu1 }
 0x2ba   : > { %1693 = vst [vmem:[%s3135_s28 + $0x60] sm:$0xff] %v1677_v38  ;;  %v1678_v18 = vmax.f32 %v1662_v58, 0.0  ;;  %v1546_v60 = vadd.f32 %v2083_v28, %v3121_v36  ;;  %v2086_v29 = vadd.f32 %v2085_v13, %v2084_v2 }
 0x2bc   : > { %1694 = vst [vmem:[%s3135_s28 + $0x68] sm:$0xff] %v1678_v18  ;;  %v1643_v21 = vadd.f32 %v3116_v39, %v1546_v60  ;;  %v1549_v19 = vadd.f32 %v2086_v29, %v3121_v36 }
 0x2be   : > { %v1663_v4 = vadd.f32 %v1643_v21, %v1302_v10  ;;  %v1646_v32 = vadd.f32 %v3126_v61, %v1549_v19 }
 0x2c0   : > { %v1679_v45 = vmax.f32 %v1663_v4, 0.0  ;;  %v1664_v47 = vadd.f32 %v1646_v32, %v1303_v24 }
 0x2c2   : > { %1695 = vst [vmem:[%s3135_s28 + $0x70] sm:$0xff] %v1679_v45  ;;  %v1680_v39 = vmax.f32 %v1664_v47, 0.0 }
 0x2c4   : > { %1696 = vst [vmem:[%s3135_s28 + $0x78] sm:$0xff] %v1680_v39 }
 0x2c5   : > { %2415 = shalt.err (!%p2412_p2)
}
 0x2c6   : > { %s2416_s24 = scalar_lea.hbm %s3194_s12, 2048  ;;  %s2420_s9 = scalar_lea.hbm %s3247_s5, 4096 }
 0x2c7   : > { %p2417_p13 = scmp.ne.s32.totalorder %s3194_s12, %s2416_s24  ;;  %p2421_p4 = scmp.lt.u32.totalorder %s3194_s12, %s3247_s5 }
 0x2c8   : > { %p2422_p5 = scmp.lt.u32.totalorder %s2420_s9, %s2416_s24  ;;  %p2424_p11 = scmp.lt.u32.totalorder %s2416_s24, %s3194_s12 }
 0x2c9   : > { %p2418_p6 = pnand %p2417_p13, %p3281_p0 }
 0x2ca   : > { %p2423_p8 = por %p2422_p5, %p2421_p4 }
 0x2cb   : > { %p2419_p10 = pneg %p2418_p6 }
 0x2cc   : > { %p2425_p1 = por %p2424_p11, %p2423_p8 }
 0x2ce   : > { %p2426_p3 = pnand %p2425_p1, %p2419_p10 }
 0x2d0   : > { %2429 = shalt.err (!%p2426_p3)
}
 0x2d1   : > { %s2483_s30 = smov 128   ;;  %s2484_s8 = smov 8  }
 0x2d2   : > { %2180 = dma.vmem_to_hbm [thread:$0]  (%p3281_p0), %s3196_s7, 2048, %s3194_s12, %s1698_s13, %s2483_s30, %s2483_s30, %s2484_s8  }
 0x2d3 PF: > { %s1726_s10 = sand.u32 1, %s2460_s18   ;;  %p3282_p7 = scmp.ne.s32.totalorder %s3255_s25, 0 }
 0x2d4   : > { %p3283_p9 = scmp.ge.s32.totalorder %s2472_s21, 2  ;;  %s1727_s17 = scalar_lea.sflag [#allocation4], %s1726_s10 }
 0x2d6   : > { %p2194_p12 = pnand %p3283_p9, %p3282_p7 }
 0x2d8   : > { %2455 = dma.done.wait (!%p2194_p12), %s1727_s17, 2048  }
 0x2d9   : > { %2457 = vsyncadd (!%p2194_p12), %s1727_s17, 4294965248  ;;  %p19_p2 = scmp.ge.s32.totalorder %s2625_s14, 4   ;;  %s3284_s18 = smov %s2464_s19 }
 0x2da   : > { %s3285_s19 = smov %s2468_s20  ;;  %s3286_s20 = smov %s2641_s27 }
 0x2db   : > { %s3287_s21 = smov %s2625_s14  ;;  %21 = sbr.rel (!%p19_p2) target bundleno = 6 (0x6), region = 93 }
 0x2e2   :  { %1732 = vsyncpa [#allocation3], 1 }
 0x2e3   :  { %1734 = vsyncpa [#allocation3 + $0x1], 1 }
 0x2e4   :  { %1735 = vsyncpa [#allocation6], 1 }
 0x2e5   :  { %1736 = vsyncpa [#allocation4], 1 }
 0x2e6   :  { %1738 = vsyncpa [#allocation4 + $0x1], 1 }

</bundles_post_ra>
